<compile_context>
chip_gen: v7x
topology: tpu7x:2x2x1
jax: 0.10.0
libtpu: 0.0.40
codegen_flags: <defaults>
</compile_context>

<pallas_src>
import math

import jax
import jax.numpy as jnp
import numpy as np
from jax.experimental import pallas as pl
from jax.experimental.pallas import tpu as pltpu


# ---------------------------------------------------------------------------
# DCT filter construction (pure Python/numpy glue, identical math to PyTorch)
# ---------------------------------------------------------------------------
def _build_filter(pos, freq, POS):
    result = math.cos(math.pi * freq * (pos + 0.5) / POS) / math.sqrt(POS)
    if freq == 0:
        return result
    return result * math.sqrt(2)


def get_dct_filter(tile_size_x, tile_size_y, mapper_x, mapper_y, channel):
    assert len(mapper_x) == len(mapper_y)
    assert channel % len(mapper_x) == 0, "channel must be divisible by num_freq"
    dct_filter = np.zeros((channel, tile_size_x, tile_size_y), dtype=np.float32)
    c_part = channel // len(mapper_x)
    for i, (u_x, v_y) in enumerate(zip(mapper_x, mapper_y)):
        for t_x in range(tile_size_x):
            for t_y in range(tile_size_y):
                value = _build_filter(t_x, u_x, tile_size_x) * _build_filter(
                    t_y, v_y, tile_size_y
                )
                dct_filter[i * c_part : (i + 1) * c_part, t_x, t_y] = value
    return jnp.asarray(dct_filter)


# ---------------------------------------------------------------------------
# Pallas kernel: weighted spatial-sum reduction over a tile of TN batch rows
# ---------------------------------------------------------------------------
def _dct_sum_kernel(x_ref, w_ref, o_ref):
    # x_ref: (TN, C, HW)   TN batch rows of activations
    # w_ref: (C, HW)       DCT filter (same for every batch element)
    # o_ref: (TN, C)       per-channel weighted spatial sums
    x = x_ref[...].astype(jnp.float32)          # f32 accumulate (bf16-safe, v5e VPU)
    w = w_ref[...].astype(jnp.float32)
    prod = x * w                                # VPU elementwise, broadcast over TN

    hw = prod.shape[-1]                         # static at trace time
    if hw > 128 and hw % 128 == 0:
        # Pre-sum 128-lane groups on the VPU (spare VALU slots), leaving a
        # single 128-lane XLU reduce per output vreg instead of HW/128 of them.
        acc = prod[..., 0:128]
        for g in range(1, hw // 128):
            acc = acc + prod[..., g * 128:(g + 1) * 128]
        o_ref[...] = jnp.sum(acc, axis=-1).astype(o_ref.dtype)
    else:
        o_ref[...] = jnp.sum(prod, axis=-1).astype(o_ref.dtype)


# ---------------------------------------------------------------------------
# Tiling / VMEM-budget helpers
# ---------------------------------------------------------------------------
def _vmem_budget_bytes():
    """Per-generation tile budget + scoped VMEM limit (with safe fallback)."""
    try:
        info = pltpu.get_tpu_info()
        cap = int(getattr(info, "vmem_capacity_bytes", 0)) or (64 << 20)
    except Exception:
        cap = 64 << 20  # conservative: v7x per-TC physical VMEM
    # v5e/v6e (128 MiB): budget ~56 MiB, limit ~96 MiB.
    # v7x   (64 MiB):    budget ~28 MiB, limit ~48 MiB (headroom for scratch).
    budget = min(int(cap * 0.45), 56 << 20)
    limit = min(int(cap * 0.75), 96 << 20)
    return budget, limit


def _choose_batch_tile(N, row_bytes, out_row_bytes, w_bytes, budget):
    """Pick TN = batch rows per grid step."""
    # Per-step VMEM: double-buffered x tile + double-buffered weight + output.
    avail = budget - 2 * w_bytes
    tn_budget = max(1, avail // (2 * (row_bytes + out_row_bytes)))

    # v7x megacore: for batches big enough to matter, cap TN so there are at
    # least 2 grid steps and both TensorCores get work ("parallel" batch axis).
    tn_parallel = N
    if N >= 16:
        tn_parallel = max(8, ((N // 2) // 8) * 8)

    tn = min(tn_budget, tn_parallel, N)
    if tn >= N:
        # Whole batch in one block: block dims equal full array dims (demo path).
        return N
    # Multiple of 8 for sublane-aligned (TN, C) output stores; never rounds UP
    # past the budget unless the budget is below one minimum-valid 8-row tile
    # (multi-MiB rows), where 8 is the smallest layout-legal tile anyway.
    return max(8, (tn // 8) * 8)


# ---------------------------------------------------------------------------
# Wrapper
# ---------------------------------------------------------------------------
def multi_spectral_dct_layer(x, weight):
    """x: (N, C, H, W) f32/bf16, weight: (C, H, W) f32 -> (N, C) in x.dtype."""
    N, C, H, W = x.shape
    assert weight.shape == (C, H, W)
    HW = H * W

    x_flat = x.reshape(N, C, HW)
    # Cast weight to the activation dtype so a bf16 path halves bytes read;
    # the kernel accumulates in float32 regardless.
    w_flat = weight.reshape(C, HW).astype(x.dtype)

    budget, vmem_limit = _vmem_budget_bytes()
    row_bytes = C * HW * x_flat.dtype.itemsize
    w_bytes = C * HW * w_flat.dtype.itemsize
    out_row_bytes = C * x.dtype.itemsize
    TN = _choose_batch_tile(N, row_bytes, out_row_bytes, w_bytes, budget)

    grid = (pl.cdiv(N, TN),)  # ragged trailing block is safe: row-local outputs

    out = pl.pallas_call(
        _dct_sum_kernel,
        out_shape=jax.ShapeDtypeStruct((N, C), x.dtype),
        grid_spec=pltpu.PrefetchScalarGridSpec(
            num_scalar_prefetch=0,
            grid=grid,
            in_specs=[
                pl.BlockSpec((TN, C, HW), lambda n: (n, 0, 0)),
                pl.BlockSpec((C, HW), lambda n: (0, 0)),  # constant: never re-fetched
            ],
            out_specs=pl.BlockSpec((TN, C), lambda n: (n, 0)),
        ),
        compiler_params=pltpu.CompilerParams(
            dimension_semantics=("parallel",),   # v7x: shard batch tiles across 2 TCs
            vmem_limit_bytes=vmem_limit,
        ),
    )(x_flat, w_flat)
    return out


# ---------------------------------------------------------------------------
# Reference (pure JAX) for sanity checking
# ---------------------------------------------------------------------------
def multi_spectral_dct_layer_ref(x, weight):
    return jnp.sum(x * weight[None], axis=(2, 3))


if __name__ == "__main__":
    # Small shapes consistent with the module: batch=2, channels=4, 16x16 DCT
    # tile, two frequency components (channel % num_freq == 0).
    N, C, H, W = 2, 4, 16, 16
    mapper_x = [0, 8]
    mapper_y = [0, 8]

    weight = get_dct_filter(H, W, mapper_x, mapper_y, C)

    key = jax.random.PRNGKey(0)
    x = jax.random.normal(key, (N, C, H, W), dtype=jnp.float32)

    y = multi_spectral_dct_layer(x, weight)
    y = jax.block_until_ready(y)

    y_ref = multi_spectral_dct_layer_ref(x, weight)
    np.testing.assert_allclose(np.asarray(y), np.asarray(y_ref), rtol=1e-5, atol=1e-5)

    print("KERNEL_OK")
</pallas_src>

<mosaic_0001>
module attributes {stable_mosaic.version = 11 : i64} {
  func.func @_dct_sum_kernel(%arg0: i32, %arg1: memref<2x4x256xf32, #tpu.memory_space<vmem>>, %arg2: memref<4x256xf32, #tpu.memory_space<vmem>>, %arg3: memref<2x4xf32, #tpu.memory_space<vmem>>) attributes {dimension_semantics = [#tpu.dimension_semantics<parallel>], iteration_bounds = array<i64: 1>, scalar_prefetch = 0 : i64, scratch_operands = 0 : i64, tpu.core_type = #tpu.core_type<tc>, window_params = [{transform_indices = @transform_0, window_bounds = array<i64: 2, 4, 256>}, {pipeline_mode = #tpu.pipeline_mode<synchronous>, transform_indices = @transform_1, window_bounds = array<i64: 4, 256>}, {transform_indices = @transform_2, window_bounds = array<i64: 2, 4>}]} {
    %c0 = arith.constant 0 : index
    %c0_0 = arith.constant 0 : index
    %c0_1 = arith.constant 0 : index
    %0 = vector.load %arg1[%c0, %c0_0, %c0_1] : memref<2x4x256xf32, #tpu.memory_space<vmem>>, vector<2x4x256xf32>
    %c0_2 = arith.constant 0 : index
    %c0_3 = arith.constant 0 : index
    %1 = vector.load %arg2[%c0_2, %c0_3] : memref<4x256xf32, #tpu.memory_space<vmem>>, vector<4x256xf32>
    %2 = vector.shape_cast %1 : vector<4x256xf32> to vector<1x4x256xf32>
    %3 = vector.broadcast %2 : vector<1x4x256xf32> to vector<2x4x256xf32>
    %4 = arith.mulf %0, %3 : vector<2x4x256xf32>
    %5 = vector.extract_strided_slice %4 {offsets = [0, 0, 0], sizes = [2, 4, 128], strides = [1, 1, 1]} : vector<2x4x256xf32> to vector<2x4x128xf32>
    %6 = vector.extract_strided_slice %4 {offsets = [0, 0, 128], sizes = [2, 4, 128], strides = [1, 1, 1]} : vector<2x4x256xf32> to vector<2x4x128xf32>
    %7 = arith.addf %5, %6 : vector<2x4x128xf32>
    %cst = arith.constant dense<0.000000e+00> : vector<2x4xf32>
    %8 = vector.multi_reduction <add>, %7, %cst [2] : vector<2x4x128xf32> to vector<2x4xf32>
    %c0_4 = arith.constant 0 : index
    %c0_5 = arith.constant 0 : index
    %9 = vector.load %arg3[%c0_4, %c0_5] : memref<2x4xf32, #tpu.memory_space<vmem>>, vector<2x4xf32>
    tpu.vector_store %arg3[%c0_4, %c0_5], %8 {strides = array<i32>} : memref<2x4xf32, #tpu.memory_space<vmem>>, vector<2x4xf32>,
    return
  }
  func.func @transform_0(%arg0: i32) -> (i32, i32, i32) {
    %c0_i32 = arith.constant 0 : i32
    %c0_i32_0 = arith.constant 0 : i32
    %c0_i32_1 = arith.constant 0 : i32
    return %arg0, %c0_i32, %c0_i32_0 : i32, i32, i32
  }
  func.func @transform_1(%arg0: i32) -> (i32, i32) {
    %c0_i32 = arith.constant 0 : i32
    %c0_i32_0 = arith.constant 0 : i32
    %c0_i32_1 = arith.constant 0 : i32
    return %c0_i32, %c0_i32_0 : i32, i32
  }
  func.func @transform_2(%arg0: i32) -> (i32, i32) {
    %c0_i32 = arith.constant 0 : i32
    %c0_i32_0 = arith.constant 0 : i32
    return %arg0, %c0_i32 : i32, i32
  }
}

</mosaic_0001>

<bundles_post_ra>
// kernel: tpu_custom_call.1
= control target key start
LH: loop header
LB: loop body
LE: loop exit
PB: predicated region body
PF: predicated region fallthrough
CT: control target
= control target key end

     0   :  { %7 = vsyncpa [#allocation3], 0  ;;  %s224_s0 = inlined_call_operand.hbm [shape: f32[2,4,256], index: 0, kind: input, shape index: {}]   ;;  %s225_s1 = inlined_call_operand.hbm [shape: f32[4,256], index: 1, kind: input, shape index: {}]   ;;  %s226_s2 = inlined_call_operand.hbm [shape: f32[2,4], index: 2, kind: output, shape index: {}]  }
   0x1   :  { %8 = vsyncpa [#allocation6], 0 }
   0x2   :  { %9 = vsyncpa [#allocation4], 0  ;;  %s168_s9 = smov [#allocation2]   ;;  %s96_s13 = scalar_lea.hbm %s224_s0, 256 }
   0x3   :  { %s15_s10 = sshll.u32 %s168_s9, 4  ;;  %p97_p0 = scmp.ne.s32.totalorder %s224_s0, %s96_s13  ;;  %s16_s10 = int_to_ptr.vmem [resolvable:$true] %s15_s10 }
   0x4   :  { %p100_p1 = scmp.lt.u32.totalorder %s96_s13, %s224_s0 }
   0x6   :  { %p102_p2 = pnand %p100_p1, %p97_p0 }
   0x8   :  { %105 = shalt.err (!%p102_p2)
}
   0x9   :  { %s106_s18 = scalar_lea.vmem %s16_s10, 256  ;;  %p111_p4 = scmp.lt.s32.totalorder %s16_s10, %s16_s10 }
   0xa   :  { %p107_p3 = scmp.ne.s32.totalorder %s16_s10, %s106_s18  ;;  %p112_p5 = scmp.lt.s32.totalorder %s106_s18, %s106_s18 }
   0xc   :  { %p113_p6 = por %p112_p5, %p111_p4 }
   0xe   :  { %p114_p7 = pnand %p113_p6, %p107_p3 }
  0x10   :  { %117 = shalt.err (!%p114_p7)
}
  0x11   :  { %s169_s19 = smov 128   ;;  %s170_s20 = smov 8  }
  0x12   :  { %21 = dma.hbm_to_vmem [thread:$0]  %s224_s0, 256, %s16_s10, [#allocation3], %s169_s19, %s169_s19, %s170_s20  }
  0x13   :  { %s171_s23 = smov [#allocation5]   ;;  %s118_s27 = scalar_lea.hbm %s225_s1, 128 }
  0x14   :  { %s28_s24 = sshll.u32 %s171_s23, 4  ;;  %p119_p8 = scmp.ne.s32.totalorder %s225_s1, %s118_s27  ;;  %s29_s24 = int_to_ptr.vmem [resolvable:$true] %s28_s24 }
  0x15   :  { %p122_p9 = scmp.lt.u32.totalorder %s118_s27, %s225_s1 }
  0x17   :  { %p124_p10 = pnand %p122_p9, %p119_p8 }
  0x19   :  { %127 = shalt.err (!%p124_p10)
}
  0x1a   :  { %s128_s4 = scalar_lea.vmem %s29_s24, 128  ;;  %p133_p12 = scmp.lt.s32.totalorder %s29_s24, %s29_s24 }
  0x1b   :  { %p129_p11 = scmp.ne.s32.totalorder %s29_s24, %s128_s4  ;;  %p134_p13 = scmp.lt.s32.totalorder %s128_s4, %s128_s4 }
  0x1d   :  { %p135_p0 = por %p134_p13, %p133_p12 }
  0x1f   :  { %p136_p1 = pnand %p135_p0, %p129_p11 }
  0x21   :  { %139 = shalt.err (!%p136_p1)
}
  0x22   :  { %31 = dma.hbm_to_vmem [thread:$0]  %s225_s1, 128, %s29_s24, [#allocation6]  }
  0x23   :  { %162 = dma.done.wait [#allocation3], 256  }
  0x24   :  { %163 = vsyncadd [#allocation3], 4294967040 }
  0x25   :  { %164 = dma.done.wait [#allocation6], 128  }
  0x26   :  { %165 = vsyncadd [#allocation6], 4294967168  ;;  %v38_v0 = vld [vmem:[#allocation2] sm:$0xff]  ;;  %v40_v1 = vld [vmem:[#allocation5] sm:$0xff]  ;;  %vm51_vm0 = vcmask 1043456   ;;  %v60_v11 = vlaneseq  ;;  %s172_s1 = smov [#allocation7]  }
  0x27   :  { %v39_v2 = vld [vmem:[#allocation2 + $0x8] sm:$0xff]  ;;  %v41_v3 = vmul.f32 %v40_v1, %v38_v0  ;;  %s81_s6 = sshll.u32 %s172_s1, 4  ;;  %vm70_vm1 = vcmask 1041409   ;;  %vm73_vm2 = vcmask 25600   ;;  %s82_s6 = int_to_ptr.vmem [resolvable:$true] %s81_s6 }
  0x28   :  { %v42_v4 = vmul.f32 %v40_v1, %v39_v2  ;;  %v61_v12 = vand.u32 127, %v60_v11  ;;  %v63_v13 = vshrl.u32 %v60_v11, 7  ;;  %s140_s7 = scalar_lea.vmem %s82_s6, 32  ;;  %p145_p3 = scmp.lt.s32.totalorder %s82_s6, %s82_s6 }
  0x29   :  { %v45_v5 = vrot.slane %v41_v3, 4  ;;  %p141_p2 = scmp.ne.s32.totalorder %s82_s6, %s140_s7  ;;  %p146_p4 = scmp.lt.s32.totalorder %s140_s7, %s140_s7 }
  0x2a   :  { %v46_v6 = vrot.slane %v42_v4, 4  ;;  %v64_v15 = vsub.s32 %v61_v12, %v63_v13 }
  0x2b   :  { %v49_v7 = vadd.f32 %v45_v5, %v41_v3  ;;  %p147_p5 = por %p146_p4, %p145_p3 }
  0x2c   :  { %v50_v8 = vadd.f32 %v46_v6, %v42_v4 }
  0x2d   :  { %v52_v9 = vsel %vm51_vm0, %v49_v7, 0.0  ;;  %p148_p6 = pnand %p147_p5, %p141_p2 }
  0x2e   :  { %53 = vadd.xlane.f32.xlu0 %v52_v9  ;;  %v55_v10 = vsel %vm51_vm0, %v50_v8, 0.0 }
  0x32   :  { %56 = vadd.xlane.f32.xlu0 %v55_v10 }
  0xbb   :  { %v54_v14 = vpop.xlane.xlu0 %53 }
  0xbc   :  { %v65_v17 = vrot.slane %v54_v14, %v64_v15 }
  0xbf   :  { %v57_v16 = vpop.xlane.xlu0 %56 }
  0xc0   :  { %v69_v18 = vrot.slane %v57_v16, %v64_v15 }
  0xc2   :  { %v71_v19 = vsel %vm70_vm1, %v69_v18, %v65_v17 }
  0xc3   :  { %74 = vst.msk [vmem:[#allocation7] sm:$0x3] %vm73_vm2, %v71_v19 }
  0xc4   :  { %151 = shalt.err (!%p148_p6)
}
  0xc5   :  { %s152_s10 = scalar_lea.hbm %s226_s2, 32 }
  0xc6   :  { %p153_p7 = scmp.ne.s32.totalorder %s226_s2, %s152_s10  ;;  %p156_p8 = scmp.lt.u32.totalorder %s152_s10, %s226_s2 }
  0xc8   :  { %p158_p9 = pnand %p156_p8, %p153_p7 }
  0xca   :  { %161 = shalt.err (!%p158_p9)
}
  0xcb   :  { %84 = dma.vmem_to_hbm [thread:$0]  %s82_s6, 32, %s226_s2, [#allocation4]  }
  0xcc   :  { %166 = dma.done.wait [#allocation4], 32  }
  0xcd   :  { %167 = vsyncadd [#allocation4], 4294967264 }
  0xce   :  { %88 = vsyncpa [#allocation3], 1 }
  0xcf   :  { %89 = vsyncpa [#allocation6], 1 }
  0xd0   :  { %90 = vsyncpa [#allocation4], 1 }

</bundles_post_ra>
